<compile_context>
chip_gen: v5e
topology: v5e:2x2
jax: 0.10.0
libtpu: 0.0.40
codegen_flags: <defaults>
</compile_context>

<pallas_src>
import math

import jax
import jax.numpy as jnp
from jax.experimental import pallas as pl
from jax.experimental.pallas import tpu as pltpu

LN_EPS = 1e-5       # torch.nn.LayerNorm default
LANE = 128          # TPU lane width


# --------------------------------------------------------------------------------------
# Hardware-aware sizing helpers
# --------------------------------------------------------------------------------------
def _vmem_budget_and_limit():
    """Generation-aware VMEM sizing: ~50% of capacity for tile sizing, ~75% scoped limit."""
    cap = 64 * 1024 * 1024  # conservative default (v7x per-TensorCore VMEM)
    try:
        cap = int(pltpu.get_tpu_info().vmem_capacity_bytes)
    except Exception:
        pass
    cap = max(min(cap, 256 * 1024 * 1024), 16 * 1024 * 1024)
    limit = min(int(cap * 0.75), cap - 4 * 1024 * 1024)
    budget = int(cap * 0.5)
    return budget, limit


def _pick_tile_rows(dw, x_bytes, out_bytes, row_budget):
    """Largest useful row tile: >= ~2 MiB streamed per grid step, bounded by the VMEM budget."""
    # Double-buffered in + out tiles plus ~6 live f32 working copies per packed row
    # (xf, centered, var/normed, y, sin, cast) — conservative so we never overshoot VMEM.
    per_row = dw * (2 * x_bytes + 2 * out_bytes + 6 * 4)
    budget_rows = max(row_budget // per_row, 8)
    target_rows = max(pl.cdiv(2 * 1024 * 1024, dw * max(x_bytes, out_bytes)), 512)
    tile = int(max(8, min(budget_rows, target_rows, 16384)))
    return max(8, (tile // 8) * 8)


# --------------------------------------------------------------------------------------
# Kernels
# --------------------------------------------------------------------------------------
def _packed_kernel(x_ref, gamma_ref, beta_ref, m_ref, w_ref, b_ref, alpha_ref, o_ref):
    """Lane-dense path: G feature groups of width D packed into dw = G*D lanes.

    m_ref: (dw, dw) block-diagonal matrix with 1/D in each DxD block -> per-group mean
    broadcast via the MXU (keeps LayerNorm stats lane-dense, no cross-lane XLU reduce).
    w_ref: (dw, dw) block-diagonal sine_factor * W^T.
    """
    xf = x_ref[...].astype(jnp.float32)                                    # (T, dw)
    m = m_ref[...]                                                         # (dw, dw) f32
    mean_b = jnp.dot(xf, m, preferred_element_type=jnp.float32)            # group means
    centered = xf - mean_b
    var_b = jnp.dot(centered * centered, m, preferred_element_type=jnp.float32)
    normed = centered * jax.lax.rsqrt(var_b + LN_EPS) * gamma_ref[...] + beta_ref[...]

    w = w_ref[...]                                                         # sine_factor folded in
    y = jnp.dot(normed.astype(w.dtype), w, preferred_element_type=jnp.float32) + b_ref[...]

    alpha = alpha_ref[0]                                                   # SMEM scalar
    o_ref[...] = (xf + alpha * jnp.sin(y)).astype(o_ref.dtype)


def _plain_kernel(x_ref, gamma_ref, beta_ref, w_ref, b_ref, alpha_ref, o_ref):
    """General path for D >= 128 (or D not dividing 128): row-wise LayerNorm over last dim."""
    xf = x_ref[...].astype(jnp.float32)                                    # (T, D)
    mean = jnp.mean(xf, axis=-1, keepdims=True)
    centered = xf - mean
    var = jnp.mean(centered * centered, axis=-1, keepdims=True)
    normed = centered * jax.lax.rsqrt(var + LN_EPS) * gamma_ref[...] + beta_ref[...]

    w = w_ref[...]                                                         # sine_factor folded in
    y = jnp.dot(normed.astype(w.dtype), w, preferred_element_type=jnp.float32) + b_ref[...]

    alpha = alpha_ref[0]
    o_ref[...] = (xf + alpha * jnp.sin(y)).astype(o_ref.dtype)


# --------------------------------------------------------------------------------------
# Parameter preparation (hoist out of the hot loop) + wrapper
# --------------------------------------------------------------------------------------
def prepare_res_linear_params(gamma, beta, w, b, re_alpha, *, sine_factor,
                              matmul_dtype=jnp.float32):
    """One-time prep: transpose, fold sine_factor into W/b, lane-dense packing, casts."""
    matmul_dtype = jnp.dtype(matmul_dtype)
    d_out, d_in = int(w.shape[0]), int(w.shape[1])
    if d_out != d_in:
        raise ValueError("ResLinear residual requires in_features == out_features")
    d = d_in
    groups = LANE // d if (d < LANE and LANE % d == 0) else 1
    dw = d * groups

    sf = jnp.float32(sine_factor)
    w_t = jnp.asarray(w, jnp.float32).T * sf          # fold sine_factor into the weights
    b_s = jnp.asarray(b, jnp.float32) * sf
    g = jnp.asarray(gamma, jnp.float32)
    be = jnp.asarray(beta, jnp.float32)

    mmat = None
    if groups > 1:
        eye_g = jnp.eye(groups, dtype=jnp.float32)
        w_t = jnp.kron(eye_g, w_t)                                        # (dw, dw) block-diag
        mmat = jnp.kron(eye_g, jnp.full((d, d), 1.0 / d, jnp.float32))    # per-group averaging
        b_s = jnp.tile(b_s, groups)
        g = jnp.tile(g, groups)
        be = jnp.tile(be, groups)

    return dict(
        d=d, groups=groups, dw=dw, matmul_dtype=matmul_dtype,
        gamma=g.reshape(1, dw), beta=be.reshape(1, dw),
        w_t=w_t.astype(matmul_dtype), bias=b_s.reshape(1, dw),
        mmat=mmat,
        alpha=jnp.asarray(re_alpha, jnp.float32).reshape(1,),
    )


def res_linear_pallas(x, params, *, tile_rows=None):
    """ResLinear forward on x of shape (..., D) using pre-prepared params."""
    d, groups, dw = params["d"], params["groups"], params["dw"]
    matmul_dtype = params["matmul_dtype"]
    orig_shape = x.shape
    if int(orig_shape[-1]) != d:
        raise ValueError(f"expected last dim {d}, got {orig_shape[-1]}")

    x2 = x.reshape(-1, d)
    n = int(x2.shape[0])
    x_bytes = jnp.dtype(x.dtype).itemsize
    out_bytes = x_bytes
    row_align = max(8, 32 // max(x_bytes, 1))        # 8 for f32, 16 for bf16, 32 for int8

    vmem_budget, vmem_limit = _vmem_budget_and_limit()

    # Resident constants: W^T (+ averaging matrix on the packed path); assume double-buffered
    # to be safe (the Buffered(1) request below may or may not be honored).
    resident_bytes = 2 * dw * dw * matmul_dtype.itemsize
    if groups > 1:
        resident_bytes += 2 * dw * dw * 4
    resident_bytes += 2 * 3 * dw * 4
    if resident_bytes > vmem_budget // 2:
        # TODO(synk): K-tiled accumulator path (matmul P3) for large D where a resident (D, D)
        # W^T does not fit the VMEM budget.
        raise ValueError("feature dim too large for the resident-weight ResLinear kernel")

    if tile_rows is None:
        tile_rows = _pick_tile_rows(dw, x_bytes, out_bytes, vmem_budget - resident_bytes)
    tile_rows = max(row_align, (int(tile_rows) // row_align) * row_align)

    n_packed = pl.cdiv(n, groups)                    # packed rows needed
    tile_rows = min(tile_rows, pl.cdiv(n_packed, row_align) * row_align)
    # v7x megacore: guarantee >= 2 "parallel" grid steps whenever there is enough work.
    if n_packed > row_align:
        half = pl.cdiv(pl.cdiv(n_packed, 2), row_align) * row_align
        tile_rows = min(tile_rows, max(row_align, half))
    tile_rows = max(row_align, tile_rows)

    n_packed_pad = pl.cdiv(n_packed, tile_rows) * tile_rows
    grid_rows = n_packed_pad // tile_rows
    n_rows_pad = n_packed_pad * groups
    if n_rows_pad != n:
        x2 = jnp.pad(x2, ((0, n_rows_pad - n), (0, 0)))   # zero rows stay finite (eps), sliced off
    xp = x2.reshape(n_packed_pad, dw)                     # lane-dense packing (contiguous reshape)

    flops_per_row = 2 * dw * dw * (3 if groups > 1 else 1)   # mean/var matmuls + main matmul
    cost = pl.CostEstimate(
        flops=flops_per_row * n_packed_pad,
        transcendentals=0,     # sin() lowers to a VPU polynomial on TPU, not an EUP op
        bytes_accessed=n_packed_pad * dw * (x_bytes + out_bytes)
                       + dw * dw * (matmul_dtype.itemsize + (4 if groups > 1 else 0))
                       + 3 * dw * 4 + 4,
    )

    row_spec = pl.BlockSpec((tile_rows, dw), lambda i: (i, 0))
    vec_shape, mat_shape = (1, dw), (dw, dw)

    if groups > 1:
        kernel = _packed_kernel
        const_args = (params["gamma"], params["beta"], params["mmat"],
                      params["w_t"], params["bias"])
        const_shapes = (vec_shape, vec_shape, mat_shape, mat_shape, vec_shape)
    else:
        kernel = _plain_kernel
        const_args = (params["gamma"], params["beta"], params["w_t"], params["bias"])
        const_shapes = (vec_shape, vec_shape, mat_shape, vec_shape)

    def run(single_buffer_consts):
        const_specs = []
        for shp in const_shapes:
            if single_buffer_consts:
                const_specs.append(
                    pl.BlockSpec(shp, lambda i: (0, 0), pipeline_mode=pl.Buffered(1)))
            else:
                const_specs.append(pl.BlockSpec(shp, lambda i: (0, 0)))
        return pl.pallas_call(
            kernel,
            out_shape=jax.ShapeDtypeStruct((n_packed_pad, dw), x.dtype),
            grid=(grid_rows,),
            in_specs=[row_spec] + const_specs
                     + [pl.BlockSpec(memory_space=pltpu.MemorySpace.SMEM)],   # re_alpha scalar
            out_specs=row_spec,
            compiler_params=pltpu.CompilerParams(
                dimension_semantics=("parallel",),    # rows independent -> megacore on v7x
                vmem_limit_bytes=vmem_limit,
            ),
            cost_estimate=cost,
        )(xp, *const_args, params["alpha"])

    try:
        out = run(True)    # single-buffer the never-changing operands (frees VMEM at large D)
    except Exception:
        out = run(False)   # pipeline_mode=pl.Buffered(1) unsupported on this JAX -> default

    out = out.reshape(n_rows_pad, d)
    if n_rows_pad != n:
        out = out[:n]
    return out.reshape(orig_shape)


def res_linear(x, gamma, beta, w, b, re_alpha, *, sine_factor, matmul_dtype=None,
               tile_rows=None):
    """Convenience wrapper (param prep + call).  Prefer prepare_res_linear_params in loops."""
    if matmul_dtype is None:
        matmul_dtype = jnp.float32 if x.dtype == jnp.float32 else x.dtype
    params = prepare_res_linear_params(gamma, beta, w, b, re_alpha,
                                       sine_factor=sine_factor, matmul_dtype=matmul_dtype)
    return res_linear_pallas(x, params, tile_rows=tile_rows)


# --------------------------------------------------------------------------------------
# Pure-JAX reference (mirrors the kernel's sine_factor folding / operand rounding)
# --------------------------------------------------------------------------------------
def _reference(x, gamma, beta, w, b, re_alpha, sine_factor, matmul_dtype=jnp.float32):
    xf = x.astype(jnp.float32)
    mean = jnp.mean(xf, axis=-1, keepdims=True)
    centered = xf - mean
    var = jnp.mean(centered * centered, axis=-1, keepdims=True)
    normed = centered * jax.lax.rsqrt(var + LN_EPS) * gamma + beta
    wf = (jnp.float32(sine_factor) * w.T.astype(jnp.float32)).astype(matmul_dtype)
    y = jnp.dot(normed.astype(matmul_dtype), wf, preferred_element_type=jnp.float32) \
        + jnp.float32(sine_factor) * b
    return (xf + re_alpha * jnp.sin(y)).astype(x.dtype)


if __name__ == "__main__":
    # ResLinear(in_features=32, out_features=32, rezero=True, sine_factor=30.0)
    batch, seq, hidden = 2, 8, 32
    sine_factor = 30.0

    key = jax.random.PRNGKey(0)
    kx, kw, kb, kx2, kw2, kb2, kx3 = jax.random.split(key, 7)

    x = jax.random.normal(kx, (batch, seq, hidden), jnp.float32)
    gamma = jnp.ones((hidden,), jnp.float32)                    # LayerNorm weight
    beta = jnp.zeros((hidden,), jnp.float32)                    # LayerNorm bias
    bound = 1.0 / math.sqrt(hidden)
    w = jax.random.uniform(kw, (hidden, hidden), jnp.float32, -bound, bound)   # (out, in)
    b = jax.random.uniform(kb, (hidden,), jnp.float32, -bound, bound)
    re_alpha = jnp.float32(0.5)   # rezero scalar; nonzero so the hot path is exercised

    # 1) Lane-dense packed path (D=32 -> 4 feature groups per 128-lane vreg), f32.
    params = prepare_res_linear_params(gamma, beta, w, b, re_alpha,
                                       sine_factor=sine_factor, matmul_dtype=jnp.float32)
    out = jax.block_until_ready(res_linear_pallas(x, params))
    ref = _reference(x, gamma, beta, w, b, re_alpha, sine_factor)
    assert out.shape == x.shape and out.dtype == x.dtype
    assert jnp.allclose(out, ref, atol=2e-4, rtol=2e-4), "f32 packed mismatch vs reference"

    # 2) Ragged row count (N=111) with a forced small tile: multi-step parallel grid + padding.
    x_r = jax.random.normal(kx2, (3, 37, hidden), jnp.float32)
    out_r = jax.block_until_ready(res_linear_pallas(x_r, params, tile_rows=8))
    ref_r = _reference(x_r, gamma, beta, w, b, re_alpha, sine_factor)
    assert out_r.shape == x_r.shape
    assert jnp.allclose(out_r, ref_r, atol=2e-4, rtol=2e-4), "ragged mismatch vs reference"

    # 3) bf16-streamed activations + bf16 matmul operands (f32 LN / accumulation / epilogue).
    #    sine_factor=1.0 so the check is not dominated by 30x amplification of bf16 rounding.
    params_bf = prepare_res_linear_params(gamma, beta, w, b, re_alpha,
                                          sine_factor=1.0, matmul_dtype=jnp.bfloat16)
    x_bf = x.astype(jnp.bfloat16)
    out_bf = jax.block_until_ready(res_linear_pallas(x_bf, params_bf))
    ref_bf = _reference(x_bf, gamma, beta, w, b, re_alpha, 1.0, matmul_dtype=jnp.bfloat16)
    assert out_bf.dtype == jnp.bfloat16
    assert jnp.allclose(out_bf.astype(jnp.float32), ref_bf.astype(jnp.float32),
                        atol=2e-2, rtol=2e-2), "bf16 mismatch vs bf16 reference"

    # 4) D=128 exercises the general (non-packed) kernel with a 2-step parallel grid.
    d2 = 128
    x128 = jax.random.normal(kx3, (2, 32, d2), jnp.float32)
    g2 = jnp.ones((d2,), jnp.float32)
    be2 = jnp.zeros((d2,), jnp.float32)
    bound2 = 1.0 / math.sqrt(d2)
    w2 = jax.random.uniform(kw2, (d2, d2), jnp.float32, -bound2, bound2)
    b2 = jax.random.uniform(kb2, (d2,), jnp.float32, -bound2, bound2)
    params2 = prepare_res_linear_params(g2, be2, w2, b2, re_alpha, sine_factor=sine_factor)
    out2 = jax.block_until_ready(res_linear_pallas(x128, params2))
    ref2 = _reference(x128, g2, be2, w2, b2, re_alpha, sine_factor)
    assert jnp.allclose(out2, ref2, atol=5e-4, rtol=5e-4), "d=128 mismatch vs reference"

    print("KERNEL_OK")
</pallas_src>

<mosaic_0001>
module attributes {stable_mosaic.version = 11 : i64} {
  func.func @_packed_kernel(%arg0: i32, %arg1: memref<8x128xf32, #tpu.memory_space<vmem>>, %arg2: memref<1x128xf32, #tpu.memory_space<vmem>>, %arg3: memref<1x128xf32, #tpu.memory_space<vmem>>, %arg4: memref<128x128xf32, #tpu.memory_space<vmem>>, %arg5: memref<128x128xf32, #tpu.memory_space<vmem>>, %arg6: memref<1x128xf32, #tpu.memory_space<vmem>>, %arg7: memref<1xf32, #tpu.memory_space<smem>>, %arg8: memref<8x128xf32, #tpu.memory_space<vmem>>) attributes {dimension_semantics = [#tpu.dimension_semantics<parallel>], iteration_bounds = array<i64: 1>, scalar_prefetch = 0 : i64, scratch_operands = 0 : i64, tpu.core_type = #tpu.core_type<tc>, window_params = [{transform_indices = @transform_0, window_bounds = array<i64: 8, 128>}, {pipeline_mode = #tpu.pipeline_mode<synchronous>, transform_indices = @transform_1, window_bounds = array<i64: 1, 128>}, {pipeline_mode = #tpu.pipeline_mode<synchronous>, transform_indices = @transform_2, window_bounds = array<i64: 1, 128>}, {pipeline_mode = #tpu.pipeline_mode<synchronous>, transform_indices = @transform_3, window_bounds = array<i64: 128, 128>}, {pipeline_mode = #tpu.pipeline_mode<synchronous>, transform_indices = @transform_4, window_bounds = array<i64: 128, 128>}, {pipeline_mode = #tpu.pipeline_mode<synchronous>, transform_indices = @transform_5, window_bounds = array<i64: 1, 128>}, {transform_indices = @transform_6, window_bounds = array<i64: 1>}, {transform_indices = @transform_7, window_bounds = array<i64: 8, 128>}]} {
    %c0 = arith.constant 0 : index
    %c0_0 = arith.constant 0 : index
    %0 = vector.load %arg1[%c0, %c0_0] : memref<8x128xf32, #tpu.memory_space<vmem>>, vector<8x128xf32>
    %c0_1 = arith.constant 0 : index
    %c0_2 = arith.constant 0 : index
    %1 = vector.load %arg4[%c0_1, %c0_2] : memref<128x128xf32, #tpu.memory_space<vmem>>, vector<128x128xf32>
    %cst = arith.constant dense<0.000000e+00> : vector<8x128xf32>
    %2 = tpu.matmul %0, %1, %cst {dimension_numbers = #tpu.dot_dimension_numbers<[1], [0], [0], [1], [0, 0, 1, 1], [], []>} : vector<8x128xf32>, vector<128x128xf32>, vector<8x128xf32> -> vector<8x128xf32>
    %3 = arith.subf %0, %2 : vector<8x128xf32>
    %4 = arith.mulf %3, %3 : vector<8x128xf32>
    %cst_3 = arith.constant dense<0.000000e+00> : vector<8x128xf32>
    %5 = tpu.matmul %4, %1, %cst_3 {dimension_numbers = #tpu.dot_dimension_numbers<[1], [0], [0], [1], [0, 0, 1, 1], [], []>} : vector<8x128xf32>, vector<128x128xf32>, vector<8x128xf32> -> vector<8x128xf32>
    %cst_4 = arith.constant 9.99999974E-6 : f32
    %6 = vector.broadcast %cst_4 : f32 to vector<8x128xf32>
    %7 = arith.addf %5, %6 : vector<8x128xf32>
    %8 = math.rsqrt %7 : vector<8x128xf32>
    %9 = arith.mulf %3, %8 : vector<8x128xf32>
    %c0_5 = arith.constant 0 : index
    %c0_6 = arith.constant 0 : index
    %10 = vector.load %arg2[%c0_5, %c0_6] : memref<1x128xf32, #tpu.memory_space<vmem>>, vector<1x128xf32>
    %11 = vector.broadcast %10 : vector<1x128xf32> to vector<8x128xf32>
    %12 = arith.mulf %9, %11 : vector<8x128xf32>
    %c0_7 = arith.constant 0 : index
    %c0_8 = arith.constant 0 : index
    %13 = vector.load %arg3[%c0_7, %c0_8] : memref<1x128xf32, #tpu.memory_space<vmem>>, vector<1x128xf32>
    %14 = vector.broadcast %13 : vector<1x128xf32> to vector<8x128xf32>
    %15 = arith.addf %12, %14 : vector<8x128xf32>
    %c0_9 = arith.constant 0 : index
    %c0_10 = arith.constant 0 : index
    %16 = vector.load %arg5[%c0_9, %c0_10] : memref<128x128xf32, #tpu.memory_space<vmem>>, vector<128x128xf32>
    %cst_11 = arith.constant dense<0.000000e+00> : vector<8x128xf32>
    %17 = tpu.matmul %15, %16, %cst_11 {dimension_numbers = #tpu.dot_dimension_numbers<[1], [0], [0], [1], [0, 0, 1, 1], [], []>} : vector<8x128xf32>, vector<128x128xf32>, vector<8x128xf32> -> vector<8x128xf32>
    %c0_12 = arith.constant 0 : index
    %c0_13 = arith.constant 0 : index
    %18 = vector.load %arg6[%c0_12, %c0_13] : memref<1x128xf32, #tpu.memory_space<vmem>>, vector<1x128xf32>
    %19 = vector.broadcast %18 : vector<1x128xf32> to vector<8x128xf32>
    %20 = arith.addf %17, %19 : vector<8x128xf32>
    %c0_14 = arith.constant 0 : index
    %21 = memref.load %arg7[%c0_14] : memref<1xf32, #tpu.memory_space<smem>>
    %22 = math.sin %20 : vector<8x128xf32>
    %23 = vector.broadcast %21 : f32 to vector<8x128xf32>
    %24 = arith.mulf %23, %22 : vector<8x128xf32>
    %25 = arith.addf %0, %24 : vector<8x128xf32>
    %c0_15 = arith.constant 0 : index
    %c0_16 = arith.constant 0 : index
    %26 = vector.load %arg8[%c0_15, %c0_16] : memref<8x128xf32, #tpu.memory_space<vmem>>, vector<8x128xf32>
    tpu.vector_store %arg8[%c0_15, %c0_16], %25 {strides = array<i32>} : memref<8x128xf32, #tpu.memory_space<vmem>>, vector<8x128xf32>,
    return
  }
  func.func @transform_0(%arg0: i32) -> (i32, i32) {
    %c0_i32 = arith.constant 0 : i32
    %c0_i32_0 = arith.constant 0 : i32
    return %arg0, %c0_i32 : i32, i32
  }
  func.func @transform_1(%arg0: i32) -> (i32, i32) {
    %c0_i32 = arith.constant 0 : i32
    %c0_i32_0 = arith.constant 0 : i32
    %c0_i32_1 = arith.constant 0 : i32
    return %c0_i32, %c0_i32_0 : i32, i32
  }
  func.func @transform_2(%arg0: i32) -> (i32, i32) {
    %c0_i32 = arith.constant 0 : i32
    %c0_i32_0 = arith.constant 0 : i32
    %c0_i32_1 = arith.constant 0 : i32
    return %c0_i32, %c0_i32_0 : i32, i32
  }
  func.func @transform_3(%arg0: i32) -> (i32, i32) {
    %c0_i32 = arith.constant 0 : i32
    %c0_i32_0 = arith.constant 0 : i32
    %c0_i32_1 = arith.constant 0 : i32
    return %c0_i32, %c0_i32_0 : i32, i32
  }
  func.func @transform_4(%arg0: i32) -> (i32, i32) {
    %c0_i32 = arith.constant 0 : i32
    %c0_i32_0 = arith.constant 0 : i32
    %c0_i32_1 = arith.constant 0 : i32
    return %c0_i32, %c0_i32_0 : i32, i32
  }
  func.func @transform_5(%arg0: i32) -> (i32, i32) {
    %c0_i32 = arith.constant 0 : i32
    %c0_i32_0 = arith.constant 0 : i32
    %c0_i32_1 = arith.constant 0 : i32
    return %c0_i32, %c0_i32_0 : i32, i32
  }
  func.func @transform_6(%arg0: i32) -> i32 {
    %c0_i32 = arith.constant 0 : i32
    %c0_i32_0 = arith.constant 0 : i32
    return %c0_i32 : i32
  }
  func.func @transform_7(%arg0: i32) -> (i32, i32) {
    %c0_i32 = arith.constant 0 : i32
    %c0_i32_0 = arith.constant 0 : i32
    return %arg0, %c0_i32 : i32, i32
  }
}

module attributes {stable_mosaic.version = 11 : i64} {
  func.func @_packed_kernel(%arg0: i32, %arg1: memref<8x128xf32, #tpu.memory_space<vmem>>, %arg2: memref<1x128xf32, #tpu.memory_space<vmem>>, %arg3: memref<1x128xf32, #tpu.memory_space<vmem>>, %arg4: memref<128x128xf32, #tpu.memory_space<vmem>>, %arg5: memref<128x128xf32, #tpu.memory_space<vmem>>, %arg6: memref<1x128xf32, #tpu.memory_space<vmem>>, %arg7: memref<1xf32, #tpu.memory_space<smem>>, %arg8: memref<8x128xf32, #tpu.memory_space<vmem>>) attributes {dimension_semantics = [#tpu.dimension_semantics<parallel>], iteration_bounds = array<i64: 1>, scalar_prefetch = 0 : i64, scratch_operands = 0 : i64, tpu.core_type = #tpu.core_type<tc>, window_params = [{transform_indices = @transform_0, window_bounds = array<i64: 8, 128>}, {pipeline_mode = #tpu.pipeline_mode<synchronous>, transform_indices = @transform_1, window_bounds = array<i64: 1, 128>}, {pipeline_mode = #tpu.pipeline_mode<synchronous>, transform_indices = @transform_2, window_bounds = array<i64: 1, 128>}, {pipeline_mode = #tpu.pipeline_mode<synchronous>, transform_indices = @transform_3, window_bounds = array<i64: 128, 128>}, {pipeline_mode = #tpu.pipeline_mode<synchronous>, transform_indices = @transform_4, window_bounds = array<i64: 128, 128>}, {pipeline_mode = #tpu.pipeline_mode<synchronous>, transform_indices = @transform_5, window_bounds = array<i64: 1, 128>}, {transform_indices = @transform_6, window_bounds = array<i64: 1>}, {transform_indices = @transform_7, window_bounds = array<i64: 8, 128>}]} {
    %c0 = arith.constant 0 : index
    %c0_0 = arith.constant 0 : index
    %0 = vector.load %arg1[%c0, %c0_0] : memref<8x128xf32, #tpu.memory_space<vmem>>, vector<8x128xf32>
    %c0_1 = arith.constant 0 : index
    %c0_2 = arith.constant 0 : index
    %1 = vector.load %arg4[%c0_1, %c0_2] : memref<128x128xf32, #tpu.memory_space<vmem>>, vector<128x128xf32>
    %cst = arith.constant dense<0.000000e+00> : vector<8x128xf32>
    %2 = tpu.matmul %0, %1, %cst {dimension_numbers = #tpu.dot_dimension_numbers<[1], [0], [0], [1], [0, 0, 1, 1], [], []>} : vector<8x128xf32>, vector<128x128xf32>, vector<8x128xf32> -> vector<8x128xf32>
    %3 = arith.subf %0, %2 : vector<8x128xf32>
    %4 = arith.mulf %3, %3 : vector<8x128xf32>
    %cst_3 = arith.constant dense<0.000000e+00> : vector<8x128xf32>
    %5 = tpu.matmul %4, %1, %cst_3 {dimension_numbers = #tpu.dot_dimension_numbers<[1], [0], [0], [1], [0, 0, 1, 1], [], []>} : vector<8x128xf32>, vector<128x128xf32>, vector<8x128xf32> -> vector<8x128xf32>
    %cst_4 = arith.constant 9.99999974E-6 : f32
    %6 = vector.broadcast %cst_4 : f32 to vector<8x128xf32>
    %7 = arith.addf %5, %6 : vector<8x128xf32>
    %8 = math.rsqrt %7 : vector<8x128xf32>
    %9 = arith.mulf %3, %8 : vector<8x128xf32>
    %c0_5 = arith.constant 0 : index
    %c0_6 = arith.constant 0 : index
    %10 = vector.load %arg2[%c0_5, %c0_6] : memref<1x128xf32, #tpu.memory_space<vmem>>, vector<1x128xf32>
    %11 = vector.broadcast %10 : vector<1x128xf32> to vector<8x128xf32>
    %12 = arith.mulf %9, %11 : vector<8x128xf32>
    %c0_7 = arith.constant 0 : index
    %c0_8 = arith.constant 0 : index
    %13 = vector.load %arg3[%c0_7, %c0_8] : memref<1x128xf32, #tpu.memory_space<vmem>>, vector<1x128xf32>
    %14 = vector.broadcast %13 : vector<1x128xf32> to vector<8x128xf32>
    %15 = arith.addf %12, %14 : vector<8x128xf32>
    %c0_9 = arith.constant 0 : index
    %c0_10 = arith.constant 0 : index
    %16 = vector.load %arg5[%c0_9, %c0_10] : memref<128x128xf32, #tpu.memory_space<vmem>>, vector<128x128xf32>
    %cst_11 = arith.constant dense<0.000000e+00> : vector<8x128xf32>
    %17 = tpu.matmul %15, %16, %cst_11 {dimension_numbers = #tpu.dot_dimension_numbers<[1], [0], [0], [1], [0, 0, 1, 1], [], []>} : vector<8x128xf32>, vector<128x128xf32>, vector<8x128xf32> -> vector<8x128xf32>
    %c0_12 = arith.constant 0 : index
    %c0_13 = arith.constant 0 : index
    %18 = vector.load %arg6[%c0_12, %c0_13] : memref<1x128xf32, #tpu.memory_space<vmem>>, vector<1x128xf32>
    %19 = vector.broadcast %18 : vector<1x128xf32> to vector<8x128xf32>
    %20 = arith.addf %17, %19 : vector<8x128xf32>
    %c0_14 = arith.constant 0 : index
    %21 = memref.load %arg7[%c0_14] : memref<1xf32, #tpu.memory_space<smem>>
    %22 = math.sin %20 : vector<8x128xf32>
    %23 = vector.broadcast %21 : f32 to vector<8x128xf32>
    %24 = arith.mulf %23, %22 : vector<8x128xf32>
    %25 = arith.addf %0, %24 : vector<8x128xf32>
    %c0_15 = arith.constant 0 : index
    %c0_16 = arith.constant 0 : index
    %26 = vector.load %arg8[%c0_15, %c0_16] : memref<8x128xf32, #tpu.memory_space<vmem>>, vector<8x128xf32>
    tpu.vector_store %arg8[%c0_15, %c0_16], %25 {strides = array<i32>} : memref<8x128xf32, #tpu.memory_space<vmem>>, vector<8x128xf32>,
    return
  }
  func.func @transform_0(%arg0: i32) -> (i32, i32) {
    %c0_i32 = arith.constant 0 : i32
    %c0_i32_0 = arith.constant 0 : i32
    return %arg0, %c0_i32 : i32, i32
  }
  func.func @transform_1(%arg0: i32) -> (i32, i32) {
    %c0_i32 = arith.constant 0 : i32
    %c0_i32_0 = arith.constant 0 : i32
    %c0_i32_1 = arith.constant 0 : i32
    return %c0_i32, %c0_i32_0 : i32, i32
  }
  func.func @transform_2(%arg0: i32) -> (i32, i32) {
    %c0_i32 = arith.constant 0 : i32
    %c0_i32_0 = arith.constant 0 : i32
    %c0_i32_1 = arith.constant 0 : i32
    return %c0_i32, %c0_i32_0 : i32, i32
  }
  func.func @transform_3(%arg0: i32) -> (i32, i32) {
    %c0_i32 = arith.constant 0 : i32
    %c0_i32_0 = arith.constant 0 : i32
    %c0_i32_1 = arith.constant 0 : i32
    return %c0_i32, %c0_i32_0 : i32, i32
  }
  func.func @transform_4(%arg0: i32) -> (i32, i32) {
    %c0_i32 = arith.constant 0 : i32
    %c0_i32_0 = arith.constant 0 : i32
    %c0_i32_1 = arith.constant 0 : i32
    return %c0_i32, %c0_i32_0 : i32, i32
  }
  func.func @transform_5(%arg0: i32) -> (i32, i32) {
    %c0_i32 = arith.constant 0 : i32
    %c0_i32_0 = arith.constant 0 : i32
    %c0_i32_1 = arith.constant 0 : i32
    return %c0_i32, %c0_i32_0 : i32, i32
  }
  func.func @transform_6(%arg0: i32) -> i32 {
    %c0_i32 = arith.constant 0 : i32
    %c0_i32_0 = arith.constant 0 : i32
    return %c0_i32 : i32
  }
  func.func @transform_7(%arg0: i32) -> (i32, i32) {
    %c0_i32 = arith.constant 0 : i32
    %c0_i32_0 = arith.constant 0 : i32
    return %arg0, %c0_i32 : i32, i32
  }
}

</mosaic_0001>

<bundles_post_ra>
// kernel: tpu_custom_call.1
= control target key start
LH: loop header
LB: loop body
LE: loop exit
PB: predicated region body
PF: predicated region fallthrough
CT: control target
= control target key end

     0   :  { %13 = vsyncpa [#allocation4], 0  ;;  %s632_s0 = inlined_call_operand.hbm [shape: f32[8,128], index: 0, kind: input, shape index: {}]   ;;  %s633_s1 = inlined_call_operand.vmem [shape: f32[1,128], index: 1, kind: input, shape index: {}]   ;;  %s634_s2 = inlined_call_operand.vmem [shape: f32[1,128], index: 2, kind: input, shape index: {}]   ;;  %s635_s3 = inlined_call_operand.hbm [shape: f32[128,128], index: 3, kind: input, shape index: {}]   ;;  %s636_s4 = inlined_call_operand.hbm [shape: f32[128,128], index: 4, kind: input, shape index: {}]   ;;  %s637_s5 = inlined_call_operand.vmem [shape: f32[1,128], index: 5, kind: input, shape index: {}]   ;;  %s638_s6 = inlined_call_operand.<no memory space> [shape: f32[1], index: 6, kind: input, shape index: {}]   ;;  %s639_s7 = inlined_call_operand.hbm [shape: f32[8,128], index: 7, kind: output, shape index: {}]  }
   0x1   :  { %14 = vsyncpa [#allocation7], 0  ;;  %s35_s26 = sshll.u32 %s635_s3, 4  ;;  %s36_s26 = int_to_ptr.hbm [resolvable:$true] %s35_s26 }
   0x2   :  { %15 = vsyncpa [#allocation5], 0  ;;  %s494_s27 = smov [#allocation6]   ;;  %s21_s8 = sshll.u32 %s632_s0, 4  ;;  %s22_s8 = int_to_ptr.hbm [resolvable:$true] %s21_s8 }
   0x3   :  { %s37_s28 = sshll.u32 %s494_s27, 4  ;;  %s495_s9 = smov 128   ;;  %s38_s28 = int_to_ptr.vmem [resolvable:$true] %s37_s28 }
   0x4   :  { %s496_s10 = smov 8   ;;  %s497_s11 = smov [#allocation3]  }
   0x5   :  { %43 = dma.hbm_to_vmem [thread:$0]  %s36_s26, 2048, %s38_s28, [#allocation7], %s495_s9, %s495_s9, %s496_s10  }
   0x6   :  { %s23_s12 = sshll.u32 %s497_s11, 4  ;;  %s48_s15 = sshll.u32 %s636_s4, 4  ;;  %s24_s12 = int_to_ptr.vmem [resolvable:$true] %s23_s12  ;;  %s49_s15 = int_to_ptr.hbm [resolvable:$true] %s48_s15 }
   0x7   :  { %26 = dma.hbm_to_vmem [thread:$0]  %s22_s8, 128, %s24_s12, [#allocation4]  }
   0x8   :  { %s498_s3 = smov [#allocation8]  }
   0x9   :  { %s50_s16 = sshll.u32 %s498_s3, 4  ;;  %s51_s16 = int_to_ptr.vmem [resolvable:$true] %s50_s16 }
   0xa   :  { %56 = dma.hbm_to_vmem [thread:$0]  %s49_s15, 2048, %s51_s16, [#allocation7], %s495_s9, %s495_s9, %s496_s10  }
   0xb   :  { %488 = dma.done.wait [#allocation4], 128  }
   0xc   :  { %489 = vsyncadd [#allocation4], 4294967168 }
   0xd   :  { %490 = dma.done.wait [#allocation7], 4096  }
   0xe   :  { %491 = vsyncadd [#allocation7], 4294963200  ;;  %v89_v0 = vld [vmem:[#allocation6 + $0x78] sm:$0xff]  ;;  %v88_v1 = vld [vmem:[#allocation6 + $0x70] sm:$0xff]  ;;  %s360_s24 = sshll.u32 %s639_s7, 4  ;;  %s361_s24 = int_to_ptr.hbm [resolvable:$true] %s360_s24 }
   0xf   :  { %90 = vmatpush.msra.mxu0 %v89_v0  ;;  %112 = vmatpush.msra.mxu1 %v89_v0  ;;  %v87_v2 = vld [vmem:[#allocation6 + $0x68] sm:$0xff]  ;;  %v86_v3 = vld [vmem:[#allocation6 + $0x60] sm:$0xff]  ;;  %v85_v4 = vld [vmem:[#allocation6 + $0x58] sm:$0xff]  ;;  %v499_v0 = vmov 683565275  }
  0x10   :  { %v84_v5 = vld [vmem:[#allocation6 + $0x50] sm:$0xff]  ;;  %v83_v6 = vld [vmem:[#allocation6 + $0x48] sm:$0xff]  ;;  %v82_v7 = vld [vmem:[#allocation6 + $0x40] sm:$0xff] }
  0x11   :  { %91 = vmatpush.msra.mxu0 %v88_v1  ;;  %113 = vmatpush.msra.mxu1 %v88_v1  ;;  %v81_v8 = vld [vmem:[#allocation6 + $0x38] sm:$0xff]  ;;  %v80_v9 = vld [vmem:[#allocation6 + $0x30] sm:$0xff]  ;;  %v79_v10 = vld [vmem:[#allocation6 + $0x28] sm:$0xff] }
  0x12   :  { %v78_v11 = vld [vmem:[#allocation6 + $0x20] sm:$0xff]  ;;  %v77_v12 = vld [vmem:[#allocation6 + $0x18] sm:$0xff]  ;;  %v76_v13 = vld [vmem:[#allocation6 + $0x10] sm:$0xff] }
  0x13   :  { %92 = vmatpush.msra.mxu0 %v87_v2  ;;  %114 = vmatpush.msra.mxu1 %v87_v2  ;;  %v75_v14 = vld [vmem:[#allocation6 + $0x8] sm:$0xff]  ;;  %v74_v15 = vld [vmem:[#allocation6] sm:$0xff]  ;;  %v556_v16 = vld [vmem:[#allocation3] sm:$0xff]  ;;  %v500_v2 = vmov 2475754826  }
  0x14   :  { %v168_v17 = vld [vmem:[#allocation8 + $0x78] sm:$0xff]  ;;  %v167_v18 = vld [vmem:[#allocation8 + $0x70] sm:$0xff]  ;;  %v166_v22 = vld [vmem:[#allocation8 + $0x68] sm:$0xff] }
  0x15   :  { %93 = vmatpush.msra.mxu0 %v86_v3  ;;  %115 = vmatpush.msra.mxu1 %v86_v3  ;;  %v165_v23 = vld [vmem:[#allocation8 + $0x60] sm:$0xff]  ;;  %v164_v24 = vld [vmem:[#allocation8 + $0x58] sm:$0xff]  ;;  %v163_v25 = vld [vmem:[#allocation8 + $0x50] sm:$0xff] }
  0x16   :  { %173 = vmatpush.msra.mxu2 %v168_v17  ;;  %v162_v26 = vld [vmem:[#allocation8 + $0x48] sm:$0xff]  ;;  %v161_v27 = vld [vmem:[#allocation8 + $0x40] sm:$0xff]  ;;  %v160_v28 = vld [vmem:[#allocation8 + $0x38] sm:$0xff] }
  0x17   :  { %94 = vmatpush.msra.mxu0 %v85_v4  ;;  %116 = vmatpush.msra.mxu1 %v85_v4  ;;  %v159_v29 = vld [vmem:[#allocation8 + $0x30] sm:$0xff]  ;;  %v158_v30 = vld [vmem:[#allocation8 + $0x28] sm:$0xff]  ;;  %v157_v31 = vld [vmem:[#allocation8 + $0x20] sm:$0xff] }
  0x18   :  { %174 = vmatpush.msra.mxu2 %v167_v18  ;;  %v156_v32 = vld [vmem:[#allocation8 + $0x18] sm:$0xff]  ;;  %v155_v33 = vld [vmem:[#allocation8 + $0x10] sm:$0xff]  ;;  %v154_v34 = vld [vmem:[#allocation8 + $0x8] sm:$0xff] }
  0x19   :  { %95 = vmatpush.msra.mxu0 %v84_v5  ;;  %117 = vmatpush.msra.mxu1 %v84_v5  ;;  %v153_v35 = vld [vmem:[#allocation8] sm:$0xff]  ;;  %v387_v44 = vld [vmem:[%s633_s1] ss:$0 sm:$0xff]  ;;  %v501_v5 = vmov 2131351028  }
  0x1a   :  { %175 = vmatpush.msra.mxu2 %v166_v22  ;;  %v388_v47 = vld [vmem:[%s634_s2] ss:$0 sm:$0xff] }
  0x1b   :  { %96 = vmatpush.msra.mxu0 %v83_v6  ;;  %118 = vmatpush.msra.mxu1 %v83_v6  ;;  %v389_v50 = vld [vmem:[%s637_s5] ss:$0 sm:$0xff]  ;;  %s506_s5 = smov [#allocation9]  }
  0x1c   :  { %176 = vmatpush.msra.mxu2 %v165_v23  ;;  %s358_s21 = sshll.u32 %s506_s5, 4  ;;  %s359_s21 = int_to_ptr.vmem [resolvable:$true] %s358_s21 }
  0x1d   :  { %97 = vmatpush.msra.mxu0 %v82_v7  ;;  %119 = vmatpush.msra.mxu1 %v82_v7 }
  0x1e   :  { %177 = vmatpush.msra.mxu2 %v164_v24 }
  0x1f   :  { %98 = vmatpush.msra.mxu0 %v81_v8  ;;  %120 = vmatpush.msra.mxu1 %v81_v8  ;;  %v502_v8 = vmov 2102212464  }
  0x20   :  { %178 = vmatpush.msra.mxu2 %v163_v25 }
  0x21   :  { %99 = vmatpush.msra.mxu0 %v80_v9  ;;  %121 = vmatpush.msra.mxu1 %v80_v9 }
  0x22   :  { %179 = vmatpush.msra.mxu2 %v162_v26 }
  0x23   :  { %100 = vmatpush.msra.mxu0 %v79_v10  ;;  %122 = vmatpush.msra.mxu1 %v79_v10 }
  0x24   :  { %180 = vmatpush.msra.mxu2 %v161_v27 }
  0x25   :  { %101 = vmatpush.msra.mxu0 %v78_v11  ;;  %123 = vmatpush.msra.mxu1 %v78_v11  ;;  %v503_v11 = vmov 920167782  }
  0x26   :  { %181 = vmatpush.msra.mxu2 %v160_v28 }
  0x27   :  { %102 = vmatpush.msra.mxu0 %v77_v12  ;;  %124 = vmatpush.msra.mxu1 %v77_v12 }
  0x28   :  { %182 = vmatpush.msra.mxu2 %v159_v29 }
  0x29   :  { %103 = vmatpush.msra.mxu0 %v76_v13  ;;  %125 = vmatpush.msra.mxu1 %v76_v13 }
  0x2a   :  { %183 = vmatpush.msra.mxu2 %v158_v30 }
  0x2b   :  { %104 = vmatpush.msra.mxu0 %v75_v14  ;;  %126 = vmatpush.msra.mxu1 %v75_v14  ;;  %v504_v14 = vmov 1326507024  }
  0x2c   :  { %184 = vmatpush.msra.mxu2 %v157_v31 }
  0x2d   :  { %105 = vmatpush.msra.mxu0 %v74_v15  ;;  %127 = vmatpush.msra.mxu1 %v74_v15 }
  0x2e   :  { %106 = vmatmul.f32.vlgmr.msra.gmra.mxu0 %v556_v16  ;;  %185 = vmatpush.msra.mxu2 %v156_v32 }
  0x30   :  { %186 = vmatpush.msra.mxu2 %v155_v33 }
  0x32   :  { %187 = vmatpush.msra.mxu2 %v154_v34 }
  0x34   :  { %188 = vmatpush.msra.mxu2 %v153_v35 }
  0xab   :  { %v107_v19 = vpop.f32.mrf.mxu0 }
  0xac   :  { %v110_v20 = vsub.f32 %v556_v16, %v107_v19 }
  0xae   :  { %v111_v21 = vmul.f32 %v110_v20, %v110_v20 }
  0xb0   :  { %128 = vmatmul.f32.vlgmr.msra.gmra.mxu1 %v111_v21 }
 0x12d   :  { %v129_v36 = vpop.f32.mrf.mxu1 }
 0x12e   :  { %v130_v37 = vadd.f32 1e-05, %v129_v36 }
 0x130   :  { %390 = vrsqrt.f32 %v130_v37  ;;  %vm138_vm1 = vweird.f32 %v130_v37 }
 0x136   :  { %v391_v38 = vpop.eup %390 }
 0x137   :  { %v133_v39 = vmul.f32 %v391_v38, %v130_v37  ;;  %vm139_vm0 = vweird.f32 %v391_v38 }
 0x138   :  { %vm140_vm2 = vmor %vm138_vm1, %vm139_vm0 }
 0x139   :  { %v134_v40 = vmul.f32 %v391_v38, %v133_v39 }
 0x13b   :  { %v135_v41 = vmul.f32 0.5, %v134_v40 }
 0x13d   :  { %v136_v42 = vsub.f32 1.5, %v135_v41 }
 0x13f   :  { %v137_v43 = vmul.f32 %v391_v38, %v136_v42 }
 0x141   :  { %v141_v45 = vsel %vm140_vm2, %v391_v38, %v137_v43 }
 0x142   :  { %v142_v46 = vmul.f32 %v141_v45, %v110_v20 }
 0x144   :  { %v147_v48 = vmul.f32 %v387_v44, %v142_v46 }
 0x146   :  { %v152_v49 = vadd.f32 %v388_v47, %v147_v48 }
 0x148   :  { %189 = vmatmul.f32.vlgmr.msra.gmra.mxu2 %v152_v49  ;;  %v505_v49 = vmov 0  }
 0x1cb   :  { %v190_v51 = vpop.f32.mrf.mxu2 }
 0x1cc   :  { %v569_v52 = vadd.f32 %v389_v50, %v190_v51 }
 0x1ce   :  { %v197_v53 = vand.u32 2139095040, %v569_v52  ;;  %v194_v56 = vand.u32 2147483647, %v569_v52  ;;  %vm196_vm15 = vcmp.lt.s32.totalorder %v569_v52, 0 }
 0x1d0   :  { %v198_v54 = vshrl.u32 %v197_v53, 23  ;;  %v201_v58 = vand.u32 8388607, %v194_v56  ;;  %vm195_vm0 = vcmp.le.f32.partialorder %v194_v56, 0.7853982 }
 0x1d2   :  { %v371_v55 = vadd.s32 4294967169, %v198_v54  ;;  %v202_v62 = vor.u32 8388608, %v201_v58 }
 0x1d4   :  { %v204_v57 = vadd.s32 1, %v371_v55  ;;  %v586_v22 = vshll.u32 %v202_v62, 8 }
 0x1d6   :  { %vm205_vm3 = vcmp.gt.s32.totalorder %v204_v57, 0  ;;  %v243_v31 = vand.u32 65535, %v586_v22  ;;  %v244_v32 = vshrl.u32 %v586_v22, 16 }
 0x1d7   :  { %v206_v59 = vsel %vm205_vm3, %v204_v57, 0 }
 0x1d8   :  { %v208_v60 = vand.u32 31, %v206_v59  ;;  %v577_v63 = vshrl.u32 %v206_v59, 5 }
 0x1da   :  { %v575_v61 = vsub.s32 32, %v208_v60  ;;  %v211_v1 = vshll.u32 %v499_v0, %v208_v60  ;;  %v214_v3 = vshll.u32 %v500_v2, %v208_v60  ;;  %v217_v7 = vshll.u32 %v501_v5, %v208_v60 }
 0x1db   :  { %v220_v10 = vshll.u32 %v502_v8, %v208_v60  ;;  %v223_v13 = vshll.u32 %v503_v11, %v208_v60  ;;  %vm226_vm4 = vcmp.lt.s32.totalorder %v577_v63, 1  ;;  %vm229_vm5 = vcmp.lt.s32.totalorder %v577_v63, 4 }
 0x1dc   :  { %v212_v4 = vshrl.u32 %v500_v2, %v575_v61  ;;  %v215_v6 = vshrl.u32 %v501_v5, %v575_v61  ;;  %v218_v9 = vshrl.u32 %v502_v8, %v575_v61  ;;  %v221_v12 = vshrl.u32 %v503_v11, %v575_v61 }
 0x1dd   :  { %v224_v15 = vshrl.u32 %v504_v14, %v575_v61  ;;  %vm228_vm6 = vcmp.lt.s32.totalorder %v577_v63, 3  ;;  %vm227_vm7 = vcmp.lt.s32.totalorder %v577_v63, 2  ;;  %v210_v60 = vshrl.u32 %v499_v0, %v575_v61 }
 0x1de   :  { %v213_v17 = vor.u32 %v212_v4, %v211_v1  ;;  %v216_v18 = vor.u32 %v215_v6, %v214_v3  ;;  %v219_v19 = vor.u32 %v218_v9, %v217_v7  ;;  %v222_v20 = vor.u32 %v221_v12, %v220_v10 }
 0x1df   :  { %v225_v21 = vor.u32 %v224_v15, %v223_v13 }
 0x1e0   :  { %v234_v23 = vsel %vm226_vm4, %v213_v17, %v216_v18  ;;  %v238_v24 = vsel %vm226_vm4, %v216_v18, %v219_v19  ;;  %v235_v25 = vsel %vm229_vm5, %v222_v20, 920167782  ;;  %v231_v57 = vsel %vm229_vm5, %v219_v19, 2102212464 }
 0x1e1   :  { %v239_v26 = vsel %vm229_vm5, %v225_v21, 1326507024  ;;  %v236_v27 = vsel %vm228_vm6, %v219_v19, %v235_v25  ;;  %v230_v5 = vsel %vm226_vm4, %v210_v60, %v213_v17  ;;  %v232_v6 = vsel %vm228_vm6, %v216_v18, %v231_v57 }
 0x1e2   :  { %v240_v28 = vsel %vm228_vm6, %v222_v20, %v239_v26  ;;  %v237_v29 = vsel %vm227_vm7, %v234_v23, %v236_v27  ;;  %v233_v61 = vsel %vm227_vm7, %v230_v5, %v232_v6  ;;  %vm337_vm4 = vweird.f32 %v569_v52 }
 0x1e3   :  { %v241_v30 = vsel %vm227_vm7, %v238_v24, %v240_v28  ;;  %v267_v35 = vand.u32 65535, %v237_v29  ;;  %v268_v36 = vshrl.u32 %v237_v29, 16  ;;  %v287_v14 = vmul.u32 %v586_v22, %v233_v61 }
 0x1e4   :  { %v245_v33 = vand.u32 65535, %v241_v30  ;;  %v246_v34 = vshrl.u32 %v241_v30, 16 }
 0x1e5   :  { %v270_v39 = vmul.u32 %v268_v36, %v243_v31  ;;  %v271_v40 = vmul.u32 %v267_v35, %v244_v32  ;;  %v269_v44 = vmul.u32 %v267_v35, %v243_v31  ;;  %v272_v48 = vmul.u32 %v268_v36, %v244_v32 }
 0x1e6   :  { %v248_v37 = vmul.u32 %v246_v34, %v243_v31  ;;  %v249_v38 = vmul.u32 %v245_v33, %v244_v32  ;;  %v247_v41 = vmul.u32 %v245_v33, %v243_v31  ;;  %v250_v43 = vmul.u32 %v246_v34, %v244_v32 }
 0x1e7   :  { %v273_v45 = vshll.u32 %v270_v39, 16  ;;  %v275_v51 = vshll.u32 %v271_v40, 16  ;;  %v274_v3 = vshrl.u32 %v270_v39, 16  ;;  %v276_v9 = vshrl.u32 %v271_v40, 16 }
 0x1e8   :  { %v251_v42 = vshll.u32 %v248_v37, 16  ;;  %v253_v46 = vshll.u32 %v249_v38, 16  ;;  %v252_v62 = vshrl.u32 %v248_v37, 16  ;;  %v254_v7 = vshrl.u32 %v249_v38, 16 }
 0x1e9   :  { %vm277_vm9 = vc.u32 %v269_v44, %v273_v45  ;;  %v279_v53 = vadd.s32 %v273_v45, %v269_v44 }
 0x1ea   :  { %vm255_vm8 = vc.u32 %v247_v41, %v251_v42  ;;  %v257_v47 = vadd.s32 %v251_v42, %v247_v41  ;;  %v278_v55 = vsel %vm277_vm9, 1, %v505_v49 }
 0x1eb   :  { %v256_v50 = vsel %vm255_vm8, 1, %v505_v49  ;;  %v280_v59 = vadd.s32 %v278_v55, %v272_v48  ;;  %vm281_vm11 = vc.u32 %v279_v53, %v275_v51  ;;  %v283_v12 = vadd.s32 %v279_v53, %v275_v51 }
 0x1ec   :  { %v258_v54 = vadd.s32 %v256_v50, %v250_v43  ;;  %vm259_vm10 = vc.u32 %v257_v47, %v253_v46  ;;  %v282_v2 = vsel %vm281_vm11, 1, %v505_v49 }
 0x1ed   :  { %v260_v58 = vsel %vm259_vm10, 1, %v505_v49  ;;  %v284_v4 = vadd.s32 %v282_v2, %v280_v59 }
 0x1ee   :  { %v262_v1 = vadd.s32 %v260_v58, %v258_v54 }
 0x1ef   :  { %v285_v10 = vadd.s32 %v284_v4, %v274_v3  ;;  %v349_v4 = vstv %s638_s6 }
 0x1f0   :  { %v263_v8 = vadd.s32 %v262_v1, %v252_v62 }
 0x1f1   :  { %v286_v0 = vadd.s32 %v285_v10, %v276_v9 }
 0x1f2   :  { %v264_v11 = vadd.s32 %v263_v8, %v254_v7 }
 0x1f3   :  { %v290_v13 = vadd.s32 1, %v286_v0 }
 0x1f4   :  { %vm289_vm12 = vc.u32 %v264_v11, %v283_v12  ;;  %v288_v63 = vadd.s32 %v283_v12, %v264_v11 }
 0x1f5   :  { %v291_v15 = vsel %vm289_vm12, %v290_v13, %v286_v0 }
 0x1f6   :  { %v292_v19 = vadd.s32 %v291_v15, %v287_v14 }
 0x1f8   :  { %v293_v17 = vadd.s32 536870912, %v292_v19 }
 0x1fa   :  { %v294_v20 = vshrl.u32 %v293_v17, 30 }
 0x1fc   :  { %v295_v21 = vshll.u32 %v294_v20, 30  ;;  %v318_v40 = vsub.s32 4, %v294_v20 }
 0x1fe   :  { %v296_v18 = vsub.s32 %v292_v19, %v295_v21  ;;  %v319_v45 = vsel %vm196_vm15, %v318_v40, %v294_v20 }
 0x1ff   :  { %v321_v48 = vsel %vm195_vm0, 0, %v319_v45 }
 0x200   :  { %vm297_vm13 = vcmp.lt.s32.totalorder %v296_v18, 0  ;;  %v298_v23 = vsub.s32 0, %v296_v18  ;;  %v338_v54 = vadd.s32 3, %v321_v48 }
 0x202   :  { %v299_v24 = vsel %vm297_vm13, %v298_v23, %v296_v18  ;;  %v339_v59 = vand.u32 3, %v338_v54 }
 0x203   :  { %v300_v25 = vclz %v299_v24 }
 0x204   :  { %vm341_vm1 = vcmp.eq.s32.totalorder %v339_v59, 0  ;;  %vm344_vm2 = vcmp.eq.s32.totalorder %v339_v59, 2  ;;  %vm340_vm3 = vcmp.lt.s32.totalorder %v339_v59, 2 }
 0x205   :  { %v372_v26 = vadd.s32 4294967294, %v300_v25 }
 0x207   :  { %vm373_vm14 = vcmp.lt.s32.totalorder %v372_v26, 0 }
 0x208   :  { %v303_v27 = vsel %vm373_vm14, 0, %v372_v26 }
 0x209   :  { %v304_v28 = vsub.s32 32, %v303_v27  ;;  %v308_v29 = vsub.s32 4294967266, %v303_v27  ;;  %v305_v30 = vshll.u32 %v296_v18, %v303_v27 }
 0x20b   :  { %v306_v31 = vshrl.u32 %v288_v63, %v304_v28  ;;  %v309_v32 = vadd.s32 127, %v308_v29 }
 0x20d   :  { %v307_v22 = vor.u32 %v306_v31, %v305_v30  ;;  %v310_v33 = vshll.u32 %v309_v32, 23 }
 0x20f   :  { %v311_v34 = vor.u32 4788187, %v310_v33  ;;  %v314_v36 = vcvt.s32.f32 %v307_v22 }
 0x211   :  { %v312_v35 = vand.u32 2147483647, %v311_v34 }
 0x213   :  { %v315_v37 = vmul.f32 %v314_v36, %v312_v35 }
 0x215   :  { %v316_v38 = vxor.u32 2147483648, %v315_v37 }
 0x217   :  { %v317_v39 = vsel %vm196_vm15, %v316_v38, %v315_v37 }
 0x218   :  { %v320_v41 = vsel %vm195_vm0, %v569_v52, %v317_v39 }
 0x219   :  { %v322_v42 = vmul.f32 %v320_v41, %v320_v41 }
 0x21b   :  { %v330_v43 = vmul.f32 -0.00019511016, %v322_v42  ;;  %v323_v44 = vmul.f32 -0.001358992, %v322_v42 }
 0x21d   :  { %v331_v46 = vadd.f32 0.008332121, %v330_v43  ;;  %v324_v47 = vadd.f32 0.041655596, %v323_v44 }
 0x21f   :  { %v332_v49 = vmul.f32 %v331_v46, %v322_v42  ;;  %v325_v50 = vmul.f32 %v324_v47, %v322_v42 }
 0x221   :  { %v333_v51 = vadd.f32 -0.16666654, %v332_v49  ;;  %v326_v53 = vadd.f32 -0.4999988, %v325_v50 }
 0x223   :  { %v334_v55 = vmul.f32 %v333_v51, %v322_v42  ;;  %v327_v57 = vmul.f32 %v326_v53, %v322_v42 }
 0x225   :  { %v335_v58 = vadd.f32 1.0, %v334_v55  ;;  %v328_v56 = vadd.f32 1.0, %v327_v57 }
 0x227   :  { %v336_v60 = vmul.f32 %v335_v58, %v320_v41  ;;  %v345_v62 = vxor.u32 2147483648, %v328_v56 }
 0x229   :  { %v342_v1 = vxor.u32 2147483648, %v336_v60  ;;  %v346_v3 = vsel %vm344_vm2, %v345_v62, %v336_v60 }
 0x22b   :  { %v343_v2 = vsel %vm341_vm1, %v328_v56, %v342_v1 }
 0x22c   :  { %v347_v5 = vsel %vm340_vm3, %v343_v2, %v346_v3 }
 0x22d   :  { %v348_v6 = vsel %vm337_vm4, nan, %v347_v5 }
 0x22e   :  { %v350_v7 = vmul.f32 %v349_v4, %v348_v6 }
 0x230   :  { %v351_v8 = vadd.f32 %v350_v7, %v556_v16 }
 0x232   :  { %352 = vst [vmem:[#allocation9] sm:$0xff] %v351_v8 }
 0x233   :  { %363 = dma.vmem_to_hbm [thread:$0]  %s359_s21, 128, %s361_s24, [#allocation5]  }
 0x234   :  { %492 = dma.done.wait [#allocation5], 128  }
 0x235   :  { %493 = vsyncadd [#allocation5], 4294967168 }
 0x236   :  { %368 = vsyncpa [#allocation4], 1 }
 0x237   :  { %369 = vsyncpa [#allocation7], 1 }
 0x238   :  { %370 = vsyncpa [#allocation5], 1 }

// kernel: tpu_custom_call.1
= control target key start
LH: loop header
LB: loop body
LE: loop exit
PB: predicated region body
PF: predicated region fallthrough
CT: control target
= control target key end

     0   :  { %13 = vsyncpa [#allocation4], 0  ;;  %s632_s0 = inlined_call_operand.hbm [shape: f32[8,128], index: 0, kind: input, shape index: {}]   ;;  %s633_s1 = inlined_call_operand.vmem [shape: f32[1,128], index: 1, kind: input, shape index: {}]   ;;  %s634_s2 = inlined_call_operand.vmem [shape: f32[1,128], index: 2, kind: input, shape index: {}]   ;;  %s635_s3 = inlined_call_operand.hbm [shape: f32[128,128], index: 3, kind: input, shape index: {}]   ;;  %s636_s4 = inlined_call_operand.hbm [shape: f32[128,128], index: 4, kind: input, shape index: {}]   ;;  %s637_s5 = inlined_call_operand.vmem [shape: f32[1,128], index: 5, kind: input, shape index: {}]   ;;  %s638_s6 = inlined_call_operand.<no memory space> [shape: f32[1], index: 6, kind: input, shape index: {}]   ;;  %s639_s7 = inlined_call_operand.hbm [shape: f32[8,128], index: 7, kind: output, shape index: {}]  }
   0x1   :  { %14 = vsyncpa [#allocation7], 0  ;;  %s35_s26 = sshll.u32 %s635_s3, 4  ;;  %s36_s26 = int_to_ptr.hbm [resolvable:$true] %s35_s26 }
   0x2   :  { %15 = vsyncpa [#allocation5], 0  ;;  %s494_s27 = smov [#allocation6]   ;;  %s21_s8 = sshll.u32 %s632_s0, 4  ;;  %s22_s8 = int_to_ptr.hbm [resolvable:$true] %s21_s8 }
   0x3   :  { %s37_s28 = sshll.u32 %s494_s27, 4  ;;  %s495_s9 = smov 128   ;;  %s38_s28 = int_to_ptr.vmem [resolvable:$true] %s37_s28 }
   0x4   :  { %s496_s10 = smov 8   ;;  %s497_s11 = smov [#allocation3]  }
   0x5   :  { %43 = dma.hbm_to_vmem [thread:$0]  %s36_s26, 2048, %s38_s28, [#allocation7], %s495_s9, %s495_s9, %s496_s10  }
   0x6   :  { %s23_s12 = sshll.u32 %s497_s11, 4  ;;  %s48_s15 = sshll.u32 %s636_s4, 4  ;;  %s24_s12 = int_to_ptr.vmem [resolvable:$true] %s23_s12  ;;  %s49_s15 = int_to_ptr.hbm [resolvable:$true] %s48_s15 }
   0x7   :  { %26 = dma.hbm_to_vmem [thread:$0]  %s22_s8, 128, %s24_s12, [#allocation4]  }
   0x8   :  { %s498_s3 = smov [#allocation8]  }
   0x9   :  { %s50_s16 = sshll.u32 %s498_s3, 4  ;;  %s51_s16 = int_to_ptr.vmem [resolvable:$true] %s50_s16 }
   0xa   :  { %56 = dma.hbm_to_vmem [thread:$0]  %s49_s15, 2048, %s51_s16, [#allocation7], %s495_s9, %s495_s9, %s496_s10  }
   0xb   :  { %488 = dma.done.wait [#allocation4], 128  }
   0xc   :  { %489 = vsyncadd [#allocation4], 4294967168 }
   0xd   :  { %490 = dma.done.wait [#allocation7], 4096  }
   0xe   :  { %491 = vsyncadd [#allocation7], 4294963200  ;;  %v89_v0 = vld [vmem:[#allocation6 + $0x78] sm:$0xff]  ;;  %v88_v1 = vld [vmem:[#allocation6 + $0x70] sm:$0xff]  ;;  %s360_s24 = sshll.u32 %s639_s7, 4  ;;  %s361_s24 = int_to_ptr.hbm [resolvable:$true] %s360_s24 }
   0xf   :  { %90 = vmatpush.msra.mxu0 %v89_v0  ;;  %112 = vmatpush.msra.mxu1 %v89_v0  ;;  %v87_v2 = vld [vmem:[#allocation6 + $0x68] sm:$0xff]  ;;  %v86_v3 = vld [vmem:[#allocation6 + $0x60] sm:$0xff]  ;;  %v85_v4 = vld [vmem:[#allocation6 + $0x58] sm:$0xff]  ;;  %v499_v0 = vmov 683565275  }
  0x10   :  { %v84_v5 = vld [vmem:[#allocation6 + $0x50] sm:$0xff]  ;;  %v83_v6 = vld [vmem:[#allocation6 + $0x48] sm:$0xff]  ;;  %v82_v7 = vld [vmem:[#allocation6 + $0x40] sm:$0xff] }
  0x11   :  { %91 = vmatpush.msra.mxu0 %v88_v1  ;;  %113 = vmatpush.msra.mxu1 %v88_v1  ;;  %v81_v8 = vld [vmem:[#allocation6 + $0x38] sm:$0xff]  ;;  %v80_v9 = vld [vmem:[#allocation6 + $0x30] sm:$0xff]  ;;  %v79_v10 = vld [vmem:[#allocation6 + $0x28] sm:$0xff] }
  0x12   :  { %v78_v11 = vld [vmem:[#allocation6 + $0x20] sm:$0xff]  ;;  %v77_v12 = vld [vmem:[#allocation6 + $0x18] sm:$0xff]  ;;  %v76_v13 = vld [vmem:[#allocation6 + $0x10] sm:$0xff] }
  0x13   :  { %92 = vmatpush.msra.mxu0 %v87_v2  ;;  %114 = vmatpush.msra.mxu1 %v87_v2  ;;  %v75_v14 = vld [vmem:[#allocation6 + $0x8] sm:$0xff]  ;;  %v74_v15 = vld [vmem:[#allocation6] sm:$0xff]  ;;  %v556_v16 = vld [vmem:[#allocation3] sm:$0xff]  ;;  %v500_v2 = vmov 2475754826  }
  0x14   :  { %v168_v17 = vld [vmem:[#allocation8 + $0x78] sm:$0xff]  ;;  %v167_v18 = vld [vmem:[#allocation8 + $0x70] sm:$0xff]  ;;  %v166_v22 = vld [vmem:[#allocation8 + $0x68] sm:$0xff] }
  0x15   :  { %93 = vmatpush.msra.mxu0 %v86_v3  ;;  %115 = vmatpush.msra.mxu1 %v86_v3  ;;  %v165_v23 = vld [vmem:[#allocation8 + $0x60] sm:$0xff]  ;;  %v164_v24 = vld [vmem:[#allocation8 + $0x58] sm:$0xff]  ;;  %v163_v25 = vld [vmem:[#allocation8 + $0x50] sm:$0xff] }
  0x16   :  { %173 = vmatpush.msra.mxu2 %v168_v17  ;;  %v162_v26 = vld [vmem:[#allocation8 + $0x48] sm:$0xff]  ;;  %v161_v27 = vld [vmem:[#allocation8 + $0x40] sm:$0xff]  ;;  %v160_v28 = vld [vmem:[#allocation8 + $0x38] sm:$0xff] }
  0x17   :  { %94 = vmatpush.msra.mxu0 %v85_v4  ;;  %116 = vmatpush.msra.mxu1 %v85_v4  ;;  %v159_v29 = vld [vmem:[#allocation8 + $0x30] sm:$0xff]  ;;  %v158_v30 = vld [vmem:[#allocation8 + $0x28] sm:$0xff]  ;;  %v157_v31 = vld [vmem:[#allocation8 + $0x20] sm:$0xff] }
  0x18   :  { %174 = vmatpush.msra.mxu2 %v167_v18  ;;  %v156_v32 = vld [vmem:[#allocation8 + $0x18] sm:$0xff]  ;;  %v155_v33 = vld [vmem:[#allocation8 + $0x10] sm:$0xff]  ;;  %v154_v34 = vld [vmem:[#allocation8 + $0x8] sm:$0xff] }
  0x19   :  { %95 = vmatpush.msra.mxu0 %v84_v5  ;;  %117 = vmatpush.msra.mxu1 %v84_v5  ;;  %v153_v35 = vld [vmem:[#allocation8] sm:$0xff]  ;;  %v387_v44 = vld [vmem:[%s633_s1] ss:$0 sm:$0xff]  ;;  %v501_v5 = vmov 2131351028  }
  0x1a   :  { %175 = vmatpush.msra.mxu2 %v166_v22  ;;  %v388_v47 = vld [vmem:[%s634_s2] ss:$0 sm:$0xff] }
  0x1b   :  { %96 = vmatpush.msra.mxu0 %v83_v6  ;;  %118 = vmatpush.msra.mxu1 %v83_v6  ;;  %v389_v50 = vld [vmem:[%s637_s5] ss:$0 sm:$0xff]  ;;  %s506_s5 = smov [#allocation9]  }
  0x1c   :  { %176 = vmatpush.msra.mxu2 %v165_v23  ;;  %s358_s21 = sshll.u32 %s506_s5, 4  ;;  %s359_s21 = int_to_ptr.vmem [resolvable:$true] %s358_s21 }
  0x1d   :  { %97 = vmatpush.msra.mxu0 %v82_v7  ;;  %119 = vmatpush.msra.mxu1 %v82_v7 }
  0x1e   :  { %177 = vmatpush.msra.mxu2 %v164_v24 }
  0x1f   :  { %98 = vmatpush.msra.mxu0 %v81_v8  ;;  %120 = vmatpush.msra.mxu1 %v81_v8  ;;  %v502_v8 = vmov 2102212464  }
  0x20   :  { %178 = vmatpush.msra.mxu2 %v163_v25 }
  0x21   :  { %99 = vmatpush.msra.mxu0 %v80_v9  ;;  %121 = vmatpush.msra.mxu1 %v80_v9 }
  0x22   :  { %179 = vmatpush.msra.mxu2 %v162_v26 }
  0x23   :  { %100 = vmatpush.msra.mxu0 %v79_v10  ;;  %122 = vmatpush.msra.mxu1 %v79_v10 }
  0x24   :  { %180 = vmatpush.msra.mxu2 %v161_v27 }
  0x25   :  { %101 = vmatpush.msra.mxu0 %v78_v11  ;;  %123 = vmatpush.msra.mxu1 %v78_v11  ;;  %v503_v11 = vmov 920167782  }
  0x26   :  { %181 = vmatpush.msra.mxu2 %v160_v28 }
  0x27   :  { %102 = vmatpush.msra.mxu0 %v77_v12  ;;  %124 = vmatpush.msra.mxu1 %v77_v12 }
  0x28   :  { %182 = vmatpush.msra.mxu2 %v159_v29 }
  0x29   :  { %103 = vmatpush.msra.mxu0 %v76_v13  ;;  %125 = vmatpush.msra.mxu1 %v76_v13 }
  0x2a   :  { %183 = vmatpush.msra.mxu2 %v158_v30 }
  0x2b   :  { %104 = vmatpush.msra.mxu0 %v75_v14  ;;  %126 = vmatpush.msra.mxu1 %v75_v14  ;;  %v504_v14 = vmov 1326507024  }
  0x2c   :  { %184 = vmatpush.msra.mxu2 %v157_v31 }
  0x2d   :  { %105 = vmatpush.msra.mxu0 %v74_v15  ;;  %127 = vmatpush.msra.mxu1 %v74_v15 }
  0x2e   :  { %106 = vmatmul.f32.vlgmr.msra.gmra.mxu0 %v556_v16  ;;  %185 = vmatpush.msra.mxu2 %v156_v32 }
  0x30   :  { %186 = vmatpush.msra.mxu2 %v155_v33 }
  0x32   :  { %187 = vmatpush.msra.mxu2 %v154_v34 }
  0x34   :  { %188 = vmatpush.msra.mxu2 %v153_v35 }
  0xab   :  { %v107_v19 = vpop.f32.mrf.mxu0 }
  0xac   :  { %v110_v20 = vsub.f32 %v556_v16, %v107_v19 }
  0xae   :  { %v111_v21 = vmul.f32 %v110_v20, %v110_v20 }
  0xb0   :  { %128 = vmatmul.f32.vlgmr.msra.gmra.mxu1 %v111_v21 }
 0x12d   :  { %v129_v36 = vpop.f32.mrf.mxu1 }
 0x12e   :  { %v130_v37 = vadd.f32 1e-05, %v129_v36 }
 0x130   :  { %390 = vrsqrt.f32 %v130_v37  ;;  %vm138_vm1 = vweird.f32 %v130_v37 }
 0x136   :  { %v391_v38 = vpop.eup %390 }
 0x137   :  { %v133_v39 = vmul.f32 %v391_v38, %v130_v37  ;;  %vm139_vm0 = vweird.f32 %v391_v38 }
 0x138   :  { %vm140_vm2 = vmor %vm138_vm1, %vm139_vm0 }
 0x139   :  { %v134_v40 = vmul.f32 %v391_v38, %v133_v39 }
 0x13b   :  { %v135_v41 = vmul.f32 0.5, %v134_v40 }
 0x13d   :  { %v136_v42 = vsub.f32 1.5, %v135_v41 }
 0x13f   :  { %v137_v43 = vmul.f32 %v391_v38, %v136_v42 }
 0x141   :  { %v141_v45 = vsel %vm140_vm2, %v391_v38, %v137_v43 }
 0x142   :  { %v142_v46 = vmul.f32 %v141_v45, %v110_v20 }
 0x144   :  { %v147_v48 = vmul.f32 %v387_v44, %v142_v46 }
 0x146   :  { %v152_v49 = vadd.f32 %v388_v47, %v147_v48 }
 0x148   :  { %189 = vmatmul.f32.vlgmr.msra.gmra.mxu2 %v152_v49  ;;  %v505_v49 = vmov 0  }
 0x1cb   :  { %v190_v51 = vpop.f32.mrf.mxu2 }
 0x1cc   :  { %v569_v52 = vadd.f32 %v389_v50, %v190_v51 }
 0x1ce   :  { %v197_v53 = vand.u32 2139095040, %v569_v52  ;;  %v194_v56 = vand.u32 2147483647, %v569_v52  ;;  %vm196_vm15 = vcmp.lt.s32.totalorder %v569_v52, 0 }
 0x1d0   :  { %v198_v54 = vshrl.u32 %v197_v53, 23  ;;  %v201_v58 = vand.u32 8388607, %v194_v56  ;;  %vm195_vm0 = vcmp.le.f32.partialorder %v194_v56, 0.7853982 }
 0x1d2   :  { %v371_v55 = vadd.s32 4294967169, %v198_v54  ;;  %v202_v62 = vor.u32 8388608, %v201_v58 }
 0x1d4   :  { %v204_v57 = vadd.s32 1, %v371_v55  ;;  %v586_v22 = vshll.u32 %v202_v62, 8 }
 0x1d6   :  { %vm205_vm3 = vcmp.gt.s32.totalorder %v204_v57, 0  ;;  %v243_v31 = vand.u32 65535, %v586_v22  ;;  %v244_v32 = vshrl.u32 %v586_v22, 16 }
 0x1d7   :  { %v206_v59 = vsel %vm205_vm3, %v204_v57, 0 }
 0x1d8   :  { %v208_v60 = vand.u32 31, %v206_v59  ;;  %v577_v63 = vshrl.u32 %v206_v59, 5 }
 0x1da   :  { %v575_v61 = vsub.s32 32, %v208_v60  ;;  %v211_v1 = vshll.u32 %v499_v0, %v208_v60  ;;  %v214_v3 = vshll.u32 %v500_v2, %v208_v60  ;;  %v217_v7 = vshll.u32 %v501_v5, %v208_v60 }
 0x1db   :  { %v220_v10 = vshll.u32 %v502_v8, %v208_v60  ;;  %v223_v13 = vshll.u32 %v503_v11, %v208_v60  ;;  %vm226_vm4 = vcmp.lt.s32.totalorder %v577_v63, 1  ;;  %vm229_vm5 = vcmp.lt.s32.totalorder %v577_v63, 4 }
 0x1dc   :  { %v212_v4 = vshrl.u32 %v500_v2, %v575_v61  ;;  %v215_v6 = vshrl.u32 %v501_v5, %v575_v61  ;;  %v218_v9 = vshrl.u32 %v502_v8, %v575_v61  ;;  %v221_v12 = vshrl.u32 %v503_v11, %v575_v61 }
 0x1dd   :  { %v224_v15 = vshrl.u32 %v504_v14, %v575_v61  ;;  %vm228_vm6 = vcmp.lt.s32.totalorder %v577_v63, 3  ;;  %vm227_vm7 = vcmp.lt.s32.totalorder %v577_v63, 2  ;;  %v210_v60 = vshrl.u32 %v499_v0, %v575_v61 }
 0x1de   :  { %v213_v17 = vor.u32 %v212_v4, %v211_v1  ;;  %v216_v18 = vor.u32 %v215_v6, %v214_v3  ;;  %v219_v19 = vor.u32 %v218_v9, %v217_v7  ;;  %v222_v20 = vor.u32 %v221_v12, %v220_v10 }
 0x1df   :  { %v225_v21 = vor.u32 %v224_v15, %v223_v13 }
 0x1e0   :  { %v234_v23 = vsel %vm226_vm4, %v213_v17, %v216_v18  ;;  %v238_v24 = vsel %vm226_vm4, %v216_v18, %v219_v19  ;;  %v235_v25 = vsel %vm229_vm5, %v222_v20, 920167782  ;;  %v231_v57 = vsel %vm229_vm5, %v219_v19, 2102212464 }
 0x1e1   :  { %v239_v26 = vsel %vm229_vm5, %v225_v21, 1326507024  ;;  %v236_v27 = vsel %vm228_vm6, %v219_v19, %v235_v25  ;;  %v230_v5 = vsel %vm226_vm4, %v210_v60, %v213_v17  ;;  %v232_v6 = vsel %vm228_vm6, %v216_v18, %v231_v57 }
 0x1e2   :  { %v240_v28 = vsel %vm228_vm6, %v222_v20, %v239_v26  ;;  %v237_v29 = vsel %vm227_vm7, %v234_v23, %v236_v27  ;;  %v233_v61 = vsel %vm227_vm7, %v230_v5, %v232_v6  ;;  %vm337_vm4 = vweird.f32 %v569_v52 }
 0x1e3   :  { %v241_v30 = vsel %vm227_vm7, %v238_v24, %v240_v28  ;;  %v267_v35 = vand.u32 65535, %v237_v29  ;;  %v268_v36 = vshrl.u32 %v237_v29, 16  ;;  %v287_v14 = vmul.u32 %v586_v22, %v233_v61 }
 0x1e4   :  { %v245_v33 = vand.u32 65535, %v241_v30  ;;  %v246_v34 = vshrl.u32 %v241_v30, 16 }
 0x1e5   :  { %v270_v39 = vmul.u32 %v268_v36, %v243_v31  ;;  %v271_v40 = vmul.u32 %v267_v35, %v244_v32  ;;  %v269_v44 = vmul.u32 %v267_v35, %v243_v31  ;;  %v272_v48 = vmul.u32 %v268_v36, %v244_v32 }
 0x1e6   :  { %v248_v37 = vmul.u32 %v246_v34, %v243_v31  ;;  %v249_v38 = vmul.u32 %v245_v33, %v244_v32  ;;  %v247_v41 = vmul.u32 %v245_v33, %v243_v31  ;;  %v250_v43 = vmul.u32 %v246_v34, %v244_v32 }
 0x1e7   :  { %v273_v45 = vshll.u32 %v270_v39, 16  ;;  %v275_v51 = vshll.u32 %v271_v40, 16  ;;  %v274_v3 = vshrl.u32 %v270_v39, 16  ;;  %v276_v9 = vshrl.u32 %v271_v40, 16 }
 0x1e8   :  { %v251_v42 = vshll.u32 %v248_v37, 16  ;;  %v253_v46 = vshll.u32 %v249_v38, 16  ;;  %v252_v62 = vshrl.u32 %v248_v37, 16  ;;  %v254_v7 = vshrl.u32 %v249_v38, 16 }
 0x1e9   :  { %vm277_vm9 = vc.u32 %v269_v44, %v273_v45  ;;  %v279_v53 = vadd.s32 %v273_v45, %v269_v44 }
 0x1ea   :  { %vm255_vm8 = vc.u32 %v247_v41, %v251_v42  ;;  %v257_v47 = vadd.s32 %v251_v42, %v247_v41  ;;  %v278_v55 = vsel %vm277_vm9, 1, %v505_v49 }
 0x1eb   :  { %v256_v50 = vsel %vm255_vm8, 1, %v505_v49  ;;  %v280_v59 = vadd.s32 %v278_v55, %v272_v48  ;;  %vm281_vm11 = vc.u32 %v279_v53, %v275_v51  ;;  %v283_v12 = vadd.s32 %v279_v53, %v275_v51 }
 0x1ec   :  { %v258_v54 = vadd.s32 %v256_v50, %v250_v43  ;;  %vm259_vm10 = vc.u32 %v257_v47, %v253_v46  ;;  %v282_v2 = vsel %vm281_vm11, 1, %v505_v49 }
 0x1ed   :  { %v260_v58 = vsel %vm259_vm10, 1, %v505_v49  ;;  %v284_v4 = vadd.s32 %v282_v2, %v280_v59 }
 0x1ee   :  { %v262_v1 = vadd.s32 %v260_v58, %v258_v54 }
 0x1ef   :  { %v285_v10 = vadd.s32 %v284_v4, %v274_v3  ;;  %v349_v4 = vstv %s638_s6 }
 0x1f0   :  { %v263_v8 = vadd.s32 %v262_v1, %v252_v62 }
 0x1f1   :  { %v286_v0 = vadd.s32 %v285_v10, %v276_v9 }
 0x1f2   :  { %v264_v11 = vadd.s32 %v263_v8, %v254_v7 }
 0x1f3   :  { %v290_v13 = vadd.s32 1, %v286_v0 }
 0x1f4   :  { %vm289_vm12 = vc.u32 %v264_v11, %v283_v12  ;;  %v288_v63 = vadd.s32 %v283_v12, %v264_v11 }
 0x1f5   :  { %v291_v15 = vsel %vm289_vm12, %v290_v13, %v286_v0 }
 0x1f6   :  { %v292_v19 = vadd.s32 %v291_v15, %v287_v14 }
 0x1f8   :  { %v293_v17 = vadd.s32 536870912, %v292_v19 }
 0x1fa   :  { %v294_v20 = vshrl.u32 %v293_v17, 30 }
 0x1fc   :  { %v295_v21 = vshll.u32 %v294_v20, 30  ;;  %v318_v40 = vsub.s32 4, %v294_v20 }
 0x1fe   :  { %v296_v18 = vsub.s32 %v292_v19, %v295_v21  ;;  %v319_v45 = vsel %vm196_vm15, %v318_v40, %v294_v20 }
 0x1ff   :  { %v321_v48 = vsel %vm195_vm0, 0, %v319_v45 }
 0x200   :  { %vm297_vm13 = vcmp.lt.s32.totalorder %v296_v18, 0  ;;  %v298_v23 = vsub.s32 0, %v296_v18  ;;  %v338_v54 = vadd.s32 3, %v321_v48 }
 0x202   :  { %v299_v24 = vsel %vm297_vm13, %v298_v23, %v296_v18  ;;  %v339_v59 = vand.u32 3, %v338_v54 }
 0x203   :  { %v300_v25 = vclz %v299_v24 }
 0x204   :  { %vm341_vm1 = vcmp.eq.s32.totalorder %v339_v59, 0  ;;  %vm344_vm2 = vcmp.eq.s32.totalorder %v339_v59, 2  ;;  %vm340_vm3 = vcmp.lt.s32.totalorder %v339_v59, 2 }
 0x205   :  { %v372_v26 = vadd.s32 4294967294, %v300_v25 }
 0x207   :  { %vm373_vm14 = vcmp.lt.s32.totalorder %v372_v26, 0 }
 0x208   :  { %v303_v27 = vsel %vm373_vm14, 0, %v372_v26 }
 0x209   :  { %v304_v28 = vsub.s32 32, %v303_v27  ;;  %v308_v29 = vsub.s32 4294967266, %v303_v27  ;;  %v305_v30 = vshll.u32 %v296_v18, %v303_v27 }
 0x20b   :  { %v306_v31 = vshrl.u32 %v288_v63, %v304_v28  ;;  %v309_v32 = vadd.s32 127, %v308_v29 }
 0x20d   :  { %v307_v22 = vor.u32 %v306_v31, %v305_v30  ;;  %v310_v33 = vshll.u32 %v309_v32, 23 }
 0x20f   :  { %v311_v34 = vor.u32 4788187, %v310_v33  ;;  %v314_v36 = vcvt.s32.f32 %v307_v22 }
 0x211   :  { %v312_v35 = vand.u32 2147483647, %v311_v34 }
 0x213   :  { %v315_v37 = vmul.f32 %v314_v36, %v312_v35 }
 0x215   :  { %v316_v38 = vxor.u32 2147483648, %v315_v37 }
 0x217   :  { %v317_v39 = vsel %vm196_vm15, %v316_v38, %v315_v37 }
 0x218   :  { %v320_v41 = vsel %vm195_vm0, %v569_v52, %v317_v39 }
 0x219   :  { %v322_v42 = vmul.f32 %v320_v41, %v320_v41 }
 0x21b   :  { %v330_v43 = vmul.f32 -0.00019511016, %v322_v42  ;;  %v323_v44 = vmul.f32 -0.001358992, %v322_v42 }
 0x21d   :  { %v331_v46 = vadd.f32 0.008332121, %v330_v43  ;;  %v324_v47 = vadd.f32 0.041655596, %v323_v44 }
 0x21f   :  { %v332_v49 = vmul.f32 %v331_v46, %v322_v42  ;;  %v325_v50 = vmul.f32 %v324_v47, %v322_v42 }
 0x221   :  { %v333_v51 = vadd.f32 -0.16666654, %v332_v49  ;;  %v326_v53 = vadd.f32 -0.4999988, %v325_v50 }
 0x223   :  { %v334_v55 = vmul.f32 %v333_v51, %v322_v42  ;;  %v327_v57 = vmul.f32 %v326_v53, %v322_v42 }
 0x225   :  { %v335_v58 = vadd.f32 1.0, %v334_v55  ;;  %v328_v56 = vadd.f32 1.0, %v327_v57 }
 0x227   :  { %v336_v60 = vmul.f32 %v335_v58, %v320_v41  ;;  %v345_v62 = vxor.u32 2147483648, %v328_v56 }
 0x229   :  { %v342_v1 = vxor.u32 2147483648, %v336_v60  ;;  %v346_v3 = vsel %vm344_vm2, %v345_v62, %v336_v60 }
 0x22b   :  { %v343_v2 = vsel %vm341_vm1, %v328_v56, %v342_v1 }
 0x22c   :  { %v347_v5 = vsel %vm340_vm3, %v343_v2, %v346_v3 }
 0x22d   :  { %v348_v6 = vsel %vm337_vm4, nan, %v347_v5 }
 0x22e   :  { %v350_v7 = vmul.f32 %v349_v4, %v348_v6 }
 0x230   :  { %v351_v8 = vadd.f32 %v350_v7, %v556_v16 }
 0x232   :  { %352 = vst [vmem:[#allocation9] sm:$0xff] %v351_v8 }
 0x233   :  { %363 = dma.vmem_to_hbm [thread:$0]  %s359_s21, 128, %s361_s24, [#allocation5]  }
 0x234   :  { %492 = dma.done.wait [#allocation5], 128  }
 0x235   :  { %493 = vsyncadd [#allocation5], 4294967168 }
 0x236   :  { %368 = vsyncpa [#allocation4], 1 }
 0x237   :  { %369 = vsyncpa [#allocation7], 1 }
 0x238   :  { %370 = vsyncpa [#allocation5], 1 }

</bundles_post_ra>
